<compile_context>
chip_gen: v5e
topology: v5e:2x2
jax: 0.10.0
libtpu: 0.0.40
codegen_flags: <defaults>
</compile_context>

<pallas_src>
import jax
import jax.numpy as jnp
from jax import lax
from jax.experimental import pallas as pl

# Real (module-level) shapes.
B = 2            # batch
S = 8            # sequence length
H = 32           # hidden size (config.hidden_size)
FFN = 64         # feed-forward inner dim
V = 100          # vocab size
NUM_LABELS = 2   # classifier output dim

# Lane-padded shapes (128-wide lane tiles).  Padded regions of all weights,
# biases and LN gamma/beta are zero, so padded activation lanes stay zero.
LANE = 128
V_PAD = 128
H_PAD = 128
FFN_PAD = 128
OUT_PAD = 128
N = B * S                      # all tokens, interleaved: row = s*B + b
OUT_ROWS = 8                   # packed output tile sublanes (>= 2*B)
SCALE = 1.0 / float(H) ** 0.5  # softmax scale uses the REAL hidden size


# ----------------------------------------------------------------------------
# Fused embedding + encoder-layer + classifier-head kernel (single invocation)
# ----------------------------------------------------------------------------
def fused_classifier_kernel(ids_ref, mask_ref, emb_ref, wqkv_ref, bqkv_ref,
                            wo_ref, w1_ref, w2_ref, fc_w_ref, slab_ref,
                            out_ref):
    """ids_ref:  (N, 1)   int32 token ids, interleaved ordering (row = s*B + b)
       mask_ref: (1, N)   attention mask (1.0 keep / 0.0 pad), same ordering
       emb_ref:  (V_PAD, H_PAD) bf16 embedding table
       wqkv/wo/w1/w2/fc_w: bf16 lane-padded weights
       bqkv_ref: (1, 3*H_PAD) f32
       slab_ref: (8, LANE) f32 rows: bo, b1, b2, ln1_g, ln1_b, ln2_g, ln2_b, fc_b
       out_ref:  (OUT_ROWS, LANE) f32; rows 0..B-1 logits, rows B..2B-1 cls
    """
    slab = slab_ref[...]
    bo, b1, b2 = slab[0:1, :], slab[1:2, :], slab[2:3, :]
    ln1_g, ln1_b = slab[3:4, :], slab[4:5, :]
    ln2_g, ln2_b = slab[5:6, :], slab[6:7, :]
    fc_b = slab[7:8, :]

    # --- fused embedding gather: one_hot(ids) @ emb (one MXU pass) ----------
    col = lax.broadcasted_iota(jnp.int32, (N, V_PAD), 1)
    onehot = (ids_ref[...] == col).astype(jnp.bfloat16)              # (N, V_PAD)
    x = jnp.dot(onehot, emb_ref[...],
                preferred_element_type=jnp.float32)                  # (N, H_PAD) f32

    # --- fused QKV projection (bf16 MXU datapath, f32 accumulate) -----------
    qkv = jnp.dot(x.astype(jnp.bfloat16), wqkv_ref[...],
                  preferred_element_type=jnp.float32) + bqkv_ref[...]
    q_cls = qkv[:B, 0 * H_PAD:1 * H_PAD]     # only CLS-row queries are needed
    k = qkv[:, 1 * H_PAD:2 * H_PAD]
    v = qkv[:, 2 * H_PAD:3 * H_PAD]

    # --- attention scores for CLS rows only: contract hidden axis -----------
    scores = lax.dot_general(q_cls, k, (((1,), (1,)), ((), ())),
                             preferred_element_type=jnp.float32) * SCALE   # (B, N)

    # Interleaved ordering: column c belongs to batch c % B; key-padding mask.
    row_b = lax.broadcasted_iota(jnp.int32, (B, N), 0)
    col_b = lax.broadcasted_iota(jnp.int32, (B, N), 1) % B
    keep = (col_b == row_b) & (mask_ref[...] > 0.0)
    scores = jnp.where(keep, scores, -1e9)

    # --- softmax (f32; reciprocal on the EUP) --------------------------------
    scores = scores - jnp.max(scores, axis=-1, keepdims=True)
    p = jnp.exp(scores)
    p = p * pl.reciprocal(jnp.sum(p, axis=-1, keepdims=True), approx=True)

    attn = jnp.dot(p, v, preferred_element_type=jnp.float32)          # (B, H_PAD)
    attn = jnp.dot(attn.astype(jnp.bfloat16), wo_ref[...],
                   preferred_element_type=jnp.float32) + bo

    # --- residual + layernorm 1 (stats over the H real lanes; pads are 0) ---
    h = x[:B, :] + attn
    mu = jnp.sum(h, axis=-1, keepdims=True) * (1.0 / H)
    var = jnp.sum(h * h, axis=-1, keepdims=True) * (1.0 / H) - mu * mu
    h = (h - mu) * lax.rsqrt(var + 1e-5) * ln1_g + ln1_b

    # --- feed-forward on CLS rows only ---------------------------------------
    f = jnp.maximum(
        jnp.dot(h.astype(jnp.bfloat16), w1_ref[...],
                preferred_element_type=jnp.float32) + b1, 0.0)
    f = jnp.dot(f.astype(jnp.bfloat16), w2_ref[...],
                preferred_element_type=jnp.float32) + b2

    # --- residual + layernorm 2 ----------------------------------------------
    y = h + f
    mu2 = jnp.sum(y, axis=-1, keepdims=True) * (1.0 / H)
    var2 = jnp.sum(y * y, axis=-1, keepdims=True) * (1.0 / H) - mu2 * mu2
    cls = (y - mu2) * lax.rsqrt(var2 + 1e-5) * ln2_g + ln2_b           # (B, H_PAD)

    # --- classifier head.  nn.Dropout in eval mode is identity. -------------
    # TODO(synk): training-mode dropout (Bernoulli mask via pltpu PRNG) not emitted.
    logits = jnp.dot(cls.astype(jnp.bfloat16), fc_w_ref[...],
                     preferred_element_type=jnp.float32) + fc_b        # (B, OUT_PAD)

    # Pack logits + cls into one full (8,128) tile -> single unmasked store.
    out_ref[...] = jnp.concatenate(
        [logits, cls, jnp.zeros((OUT_ROWS - 2 * B, LANE), jnp.float32)], axis=0)


# ----------------------------------------------------------------------------
# Wrapper (jitted: glue + kernel + output slicing compile to one program)
# ----------------------------------------------------------------------------
@jax.jit
def classifier_forward(params, input_ids, attention_mask):
    """Mirrors Classifier.forward: returns (logits, encoded_cls)."""
    # Interleave tokens (row = s*B + b) so the B CLS rows are rows 0..B-1.
    ids = input_ids.astype(jnp.int32).T.reshape(N, 1)
    mask = attention_mask.astype(jnp.float32).T.reshape(1, N)

    out = pl.pallas_call(
        fused_classifier_kernel,
        out_shape=jax.ShapeDtypeStruct((OUT_ROWS, LANE), jnp.float32),
    )(ids, mask,
      params["emb"], params["wqkv"], params["bqkv"], params["wo"],
      params["w1"], params["w2"], params["fc_w"], params["slab"])

    # Slice the real rows / lanes back out (pad lanes are exactly zero).
    logits = out[0:B, :NUM_LABELS]
    encoded_cls = out[B:2 * B, :H]
    return logits, encoded_cls


def _pad_to(a, shape):
    out = jnp.zeros(shape, a.dtype)
    return out.at[tuple(slice(0, s) for s in a.shape)].set(a)


def init_params(key):
    keys = jax.random.split(key, 8)
    std = 0.02
    emb = jax.random.normal(keys[0], (V, H), jnp.float32) * std
    wq = jax.random.normal(keys[1], (H, H), jnp.float32) * std
    wk = jax.random.normal(keys[2], (H, H), jnp.float32) * std
    wv = jax.random.normal(keys[3], (H, H), jnp.float32) * std
    wo = jax.random.normal(keys[4], (H, H), jnp.float32) * std
    w1 = jax.random.normal(keys[5], (H, FFN), jnp.float32) * std
    w2 = jax.random.normal(keys[6], (FFN, H), jnp.float32) * std
    # nn.Linear(cls_size, num_labels): weight is (out, in); store transposed.
    fc_w = jax.random.normal(keys[7], (H, NUM_LABELS), jnp.float32) * std

    # Fused + lane-padded QKV weight (pad region zero).
    wqkv = jnp.zeros((H_PAD, 3 * H_PAD), jnp.float32)
    wqkv = wqkv.at[:H, 0 * H_PAD:0 * H_PAD + H].set(wq)
    wqkv = wqkv.at[:H, 1 * H_PAD:1 * H_PAD + H].set(wk)
    wqkv = wqkv.at[:H, 2 * H_PAD:2 * H_PAD + H].set(wv)

    # Small-params slab: rows = bo, b1, b2, ln1_g, ln1_b, ln2_g, ln2_b, fc_b.
    # Biases are zero; LN gammas are 1 on the real lanes, 0 on pad lanes.
    slab = jnp.zeros((8, LANE), jnp.float32)
    slab = slab.at[3, :H].set(1.0)   # ln1 gamma
    slab = slab.at[5, :H].set(1.0)   # ln2 gamma

    bf16 = jnp.bfloat16
    return {
        "emb": _pad_to(emb, (V_PAD, H_PAD)).astype(bf16),
        "wqkv": wqkv.astype(bf16),
        "bqkv": jnp.zeros((1, 3 * H_PAD), jnp.float32),
        "wo": _pad_to(wo, (H_PAD, H_PAD)).astype(bf16),
        "w1": _pad_to(w1, (H_PAD, FFN_PAD)).astype(bf16),
        "w2": _pad_to(w2, (FFN_PAD, H_PAD)).astype(bf16),
        "fc_w": _pad_to(fc_w, (H_PAD, OUT_PAD)).astype(bf16),
        "slab": slab,
    }


# ----------------------------------------------------------------------------
# Pure-JAX reference (same bf16-quantized weights, f32 math) for validation
# ----------------------------------------------------------------------------
def _layernorm(h, gamma, beta):
    mu = jnp.sum(h, axis=-1, keepdims=True) * (1.0 / H)
    var = jnp.sum(h * h, axis=-1, keepdims=True) * (1.0 / H) - mu * mu
    return (h - mu) * lax.rsqrt(var + 1e-5) * gamma + beta


def reference_forward(params, input_ids, attention_mask):
    emb = params["emb"].astype(jnp.float32)
    wqkv = params["wqkv"].astype(jnp.float32)
    wo = params["wo"].astype(jnp.float32)
    w1 = params["w1"].astype(jnp.float32)
    w2 = params["w2"].astype(jnp.float32)
    fc_w = params["fc_w"].astype(jnp.float32)
    slab = params["slab"]
    bo, b1, b2 = slab[0], slab[1], slab[2]
    ln1_g, ln1_b, ln2_g, ln2_b, fc_b = slab[3], slab[4], slab[5], slab[6], slab[7]

    x = emb[input_ids]                                         # (B, S, H_PAD)
    qkv = x @ wqkv + params["bqkv"][0]
    q, k, v = qkv[..., :H_PAD], qkv[..., H_PAD:2 * H_PAD], qkv[..., 2 * H_PAD:]
    scores = jnp.einsum("bqd,bkd->bqk", q, k) * SCALE
    scores = jnp.where(attention_mask[:, None, :] > 0, scores, -1e9)
    p = jax.nn.softmax(scores, axis=-1)
    attn = jnp.einsum("bqk,bkd->bqd", p, v) @ wo + bo
    h = _layernorm(x + attn, ln1_g, ln1_b)
    f = jnp.maximum(h @ w1 + b1, 0.0)
    y = _layernorm(h + (f @ w2 + b2), ln2_g, ln2_b)
    cls = y[:, 0, :]
    logits = cls @ fc_w + fc_b
    return logits[:, :NUM_LABELS], cls[:, :H]


if __name__ == "__main__":
    key = jax.random.PRNGKey(0)
    pkey, ikey = jax.random.split(key)
    params = init_params(pkey)

    input_ids = jax.random.randint(ikey, (B, S), 0, V, dtype=jnp.int32)
    attention_mask = jnp.array(
        [[1, 1, 1, 1, 1, 1, 1, 1],
         [1, 1, 1, 1, 1, 0, 0, 0]], dtype=jnp.int32
    )

    logits, encoded_cls = classifier_forward(params, input_ids, attention_mask)
    jax.block_until_ready((logits, encoded_cls))

    assert logits.shape == (B, NUM_LABELS) and encoded_cls.shape == (B, H)
    assert bool(jnp.all(jnp.isfinite(logits)))
    assert bool(jnp.all(jnp.isfinite(encoded_cls)))

    # Numerical check vs. plain-JAX reference (bf16 activation casts + approx
    # reciprocal introduce small, bounded error).
    ref_logits, ref_cls = reference_forward(params, input_ids, attention_mask)
    assert bool(jnp.allclose(logits, ref_logits, atol=2e-2, rtol=2e-2))
    assert bool(jnp.allclose(encoded_cls, ref_cls, atol=2e-2, rtol=2e-2))

    print("KERNEL_OK")
</pallas_src>

<mosaic_0001>
module attributes {stable_mosaic.version = 11 : i64} {
  func.func @fused_classifier_kernel(%arg0: memref<16x1xi32, #tpu.memory_space<vmem>>, %arg1: memref<1x16xf32, #tpu.memory_space<vmem>>, %arg2: memref<128x128xbf16, #tpu.memory_space<vmem>>, %arg3: memref<128x384xbf16, #tpu.memory_space<vmem>>, %arg4: memref<1x384xf32, #tpu.memory_space<vmem>>, %arg5: memref<128x128xbf16, #tpu.memory_space<vmem>>, %arg6: memref<128x128xbf16, #tpu.memory_space<vmem>>, %arg7: memref<128x128xbf16, #tpu.memory_space<vmem>>, %arg8: memref<128x128xbf16, #tpu.memory_space<vmem>>, %arg9: memref<8x128xf32, #tpu.memory_space<vmem>>, %arg10: memref<8x128xf32, #tpu.memory_space<vmem>>) attributes {dimension_semantics = [], scalar_prefetch = 0 : i64, scratch_operands = 0 : i64, tpu.core_type = #tpu.core_type<tc>} {
    %c0 = arith.constant 0 : index
    %c0_0 = arith.constant 0 : index
    %0 = vector.load %arg9[%c0, %c0_0] : memref<8x128xf32, #tpu.memory_space<vmem>>, vector<8x128xf32>
    %1 = vector.extract_strided_slice %0 {offsets = [0, 0], sizes = [1, 128], strides = [1, 1]} : vector<8x128xf32> to vector<1x128xf32>
    %2 = vector.extract_strided_slice %0 {offsets = [1, 0], sizes = [1, 128], strides = [1, 1]} : vector<8x128xf32> to vector<1x128xf32>
    %3 = vector.extract_strided_slice %0 {offsets = [2, 0], sizes = [1, 128], strides = [1, 1]} : vector<8x128xf32> to vector<1x128xf32>
    %4 = vector.extract_strided_slice %0 {offsets = [3, 0], sizes = [1, 128], strides = [1, 1]} : vector<8x128xf32> to vector<1x128xf32>
    %5 = vector.extract_strided_slice %0 {offsets = [4, 0], sizes = [1, 128], strides = [1, 1]} : vector<8x128xf32> to vector<1x128xf32>
    %6 = vector.extract_strided_slice %0 {offsets = [5, 0], sizes = [1, 128], strides = [1, 1]} : vector<8x128xf32> to vector<1x128xf32>
    %7 = vector.extract_strided_slice %0 {offsets = [6, 0], sizes = [1, 128], strides = [1, 1]} : vector<8x128xf32> to vector<1x128xf32>
    %8 = vector.extract_strided_slice %0 {offsets = [7, 0], sizes = [1, 128], strides = [1, 1]} : vector<8x128xf32> to vector<1x128xf32>
    %9 = tpu.iota {dimensions = array<i32: 1>} : vector<16x128xi32>
    %c0_1 = arith.constant 0 : index
    %c0_2 = arith.constant 0 : index
    %10 = vector.load %arg0[%c0_1, %c0_2] : memref<16x1xi32, #tpu.memory_space<vmem>>, vector<16x1xi32>
    %11 = vector.broadcast %10 : vector<16x1xi32> to vector<16x128xi32>
    %12 = arith.cmpi eq, %11, %9 : vector<16x128xi32>
    %13 = arith.extui %12 : vector<16x128xi1> to vector<16x128xi32>
    %14 = arith.sitofp %13 : vector<16x128xi32> to vector<16x128xf32>
    %15 = arith.truncf %14 : vector<16x128xf32> to vector<16x128xbf16>
    %c0_3 = arith.constant 0 : index
    %c0_4 = arith.constant 0 : index
    %16 = vector.load %arg2[%c0_3, %c0_4] : memref<128x128xbf16, #tpu.memory_space<vmem>>, vector<128x128xbf16>
    %cst = arith.constant dense<0.000000e+00> : vector<16x128xf32>
    %17 = tpu.matmul %15, %16, %cst {dimension_numbers = #tpu.dot_dimension_numbers<[1], [0], [0], [1], [0, 0, 1, 1], [], []>} : vector<16x128xbf16>, vector<128x128xbf16>, vector<16x128xf32> -> vector<16x128xf32>
    %18 = arith.truncf %17 : vector<16x128xf32> to vector<16x128xbf16>
    %c0_5 = arith.constant 0 : index
    %c0_6 = arith.constant 0 : index
    %19 = vector.load %arg3[%c0_5, %c0_6] : memref<128x384xbf16, #tpu.memory_space<vmem>>, vector<128x384xbf16>
    %cst_7 = arith.constant dense<0.000000e+00> : vector<16x384xf32>
    %20 = tpu.matmul %18, %19, %cst_7 {dimension_numbers = #tpu.dot_dimension_numbers<[1], [0], [0], [1], [0, 0, 1, 1], [], []>} : vector<16x128xbf16>, vector<128x384xbf16>, vector<16x384xf32> -> vector<16x384xf32>
    %c0_8 = arith.constant 0 : index
    %c0_9 = arith.constant 0 : index
    %21 = vector.load %arg4[%c0_8, %c0_9] : memref<1x384xf32, #tpu.memory_space<vmem>>, vector<1x384xf32>
    %22 = vector.broadcast %21 : vector<1x384xf32> to vector<16x384xf32>
    %23 = arith.addf %20, %22 : vector<16x384xf32>
    %24 = vector.extract_strided_slice %23 {offsets = [0, 0], sizes = [2, 128], strides = [1, 1]} : vector<16x384xf32> to vector<2x128xf32>
    %25 = vector.extract_strided_slice %23 {offsets = [0, 128], sizes = [16, 128], strides = [1, 1]} : vector<16x384xf32> to vector<16x128xf32>
    %26 = vector.extract_strided_slice %23 {offsets = [0, 256], sizes = [16, 128], strides = [1, 1]} : vector<16x384xf32> to vector<16x128xf32>
    %cst_10 = arith.constant dense<0.000000e+00> : vector<2x16xf32>
    %27 = tpu.matmul %24, %25, %cst_10 {dimension_numbers = #tpu.dot_dimension_numbers<[1], [1], [0], [0], [0, 0, 1, 0], [], []>} : vector<2x128xf32>, vector<16x128xf32>, vector<2x16xf32> -> vector<2x16xf32>
    %cst_11 = arith.constant 0.176776692 : f32
    %28 = vector.broadcast %cst_11 : f32 to vector<2x16xf32>
    %29 = arith.mulf %27, %28 : vector<2x16xf32>
    %30 = tpu.iota {dimensions = array<i32: 0>} : vector<2x16xi32>
    %31 = tpu.iota {dimensions = array<i32: 1>} : vector<2x16xi32>
    %c2_i32 = arith.constant 2 : i32
    %c0_i32 = arith.constant 0 : i32
    %32 = arith.cmpi eq, %c2_i32, %c0_i32 : i32
    %c1_i32 = arith.constant 1 : i32
    %33 = arith.select %32, %c1_i32, %c2_i32 : i32
    %34 = vector.broadcast %33 : i32 to vector<2x16xi32>
    %35 = arith.remsi %31, %34 : vector<2x16xi32>
    %c0_i32_12 = arith.constant 0 : i32
    %36 = vector.broadcast %c0_i32_12 : i32 to vector<2x16xi32>
    %37 = arith.cmpi ne, %35, %36 : vector<2x16xi32>
    %c0_i32_13 = arith.constant 0 : i32
    %38 = vector.broadcast %c0_i32_13 : i32 to vector<2x16xi32>
    %39 = arith.cmpi slt, %35, %38 : vector<2x16xi32>
    %c0_i32_14 = arith.constant 0 : i32
    %40 = arith.cmpi slt, %33, %c0_i32_14 : i32
    %41 = vector.broadcast %40 : i1 to vector<2x16xi1>
    %42 = vector.broadcast %41 : vector<2x16xi1> to vector<2x16xi1>
    %43 = arith.xori %39, %42 : vector<2x16xi1>
    %44 = arith.andi %43, %37 : vector<2x16xi1>
    %45 = vector.broadcast %33 : i32 to vector<2x16xi32>
    %46 = arith.addi %35, %45 : vector<2x16xi32>
    %47 = arith.select %44, %46, %35 : vector<2x16xi1>, vector<2x16xi32>
    %48 = arith.cmpi eq, %47, %30 : vector<2x16xi32>
    %c0_15 = arith.constant 0 : index
    %c0_16 = arith.constant 0 : index
    %49 = vector.load %arg1[%c0_15, %c0_16] : memref<1x16xf32, #tpu.memory_space<vmem>>, vector<1x16xf32>
    %cst_17 = arith.constant 0.000000e+00 : f32
    %50 = vector.broadcast %cst_17 : f32 to vector<1x16xf32>
    %51 = arith.cmpf ogt, %49, %50 : vector<1x16xf32>
    %52 = vector.broadcast %51 : vector<1x16xi1> to vector<2x16xi1>
    %53 = arith.andi %48, %52 : vector<2x16xi1>
    %cst_18 = arith.constant -1.000000e+09 : f32
    %54 = vector.broadcast %cst_18 : f32 to vector<2x16xf32>
    %55 = arith.select %53, %29, %54 : vector<2x16xi1>, vector<2x16xf32>
    %cst_19 = arith.constant dense<0xFF800000> : vector<2xf32>
    %56 = vector.multi_reduction <maximumf>, %55, %cst_19 [1] : vector<2x16xf32> to vector<2xf32>
    %57 = vector.shape_cast %56 : vector<2xf32> to vector<2x1xf32>
    %58 = vector.broadcast %57 : vector<2x1xf32> to vector<2x16xf32>
    %59 = arith.subf %55, %58 : vector<2x16xf32>
    %60 = math.exp %59 : vector<2x16xf32>
    %cst_20 = arith.constant dense<0.000000e+00> : vector<2xf32>
    %61 = vector.multi_reduction <add>, %60, %cst_20 [1] : vector<2x16xf32> to vector<2xf32>
    %62 = vector.shape_cast %61 : vector<2xf32> to vector<2x1xf32>
    %63 = tpu.reciprocal %62 {approx = true} : vector<2x1xf32> -> vector<2x1xf32>
    %64 = vector.broadcast %63 : vector<2x1xf32> to vector<2x16xf32>
    %65 = arith.mulf %60, %64 : vector<2x16xf32>
    %cst_21 = arith.constant dense<0.000000e+00> : vector<2x128xf32>
    %66 = tpu.matmul %65, %26, %cst_21 {dimension_numbers = #tpu.dot_dimension_numbers<[1], [0], [0], [1], [0, 0, 1, 1], [], []>} : vector<2x16xf32>, vector<16x128xf32>, vector<2x128xf32> -> vector<2x128xf32>
    %67 = arith.truncf %66 : vector<2x128xf32> to vector<2x128xbf16>
    %c0_22 = arith.constant 0 : index
    %c0_23 = arith.constant 0 : index
    %68 = vector.load %arg5[%c0_22, %c0_23] : memref<128x128xbf16, #tpu.memory_space<vmem>>, vector<128x128xbf16>
    %cst_24 = arith.constant dense<0.000000e+00> : vector<2x128xf32>
    %69 = tpu.matmul %67, %68, %cst_24 {dimension_numbers = #tpu.dot_dimension_numbers<[1], [0], [0], [1], [0, 0, 1, 1], [], []>} : vector<2x128xbf16>, vector<128x128xbf16>, vector<2x128xf32> -> vector<2x128xf32>
    %70 = vector.broadcast %1 : vector<1x128xf32> to vector<2x128xf32>
    %71 = arith.addf %69, %70 : vector<2x128xf32>
    %72 = vector.extract_strided_slice %17 {offsets = [0, 0], sizes = [2, 128], strides = [1, 1]} : vector<16x128xf32> to vector<2x128xf32>
    %73 = arith.addf %72, %71 : vector<2x128xf32>
    %cst_25 = arith.constant dense<0.000000e+00> : vector<2xf32>
    %74 = vector.multi_reduction <add>, %73, %cst_25 [1] : vector<2x128xf32> to vector<2xf32>
    %75 = vector.shape_cast %74 : vector<2xf32> to vector<2x1xf32>
    %cst_26 = arith.constant 3.125000e-02 : f32
    %76 = vector.broadcast %cst_26 : f32 to vector<2x1xf32>
    %77 = arith.mulf %75, %76 : vector<2x1xf32>
    %78 = arith.mulf %73, %73 : vector<2x128xf32>
    %cst_27 = arith.constant dense<0.000000e+00> : vector<2xf32>
    %79 = vector.multi_reduction <add>, %78, %cst_27 [1] : vector<2x128xf32> to vector<2xf32>
    %80 = vector.shape_cast %79 : vector<2xf32> to vector<2x1xf32>
    %cst_28 = arith.constant 3.125000e-02 : f32
    %81 = vector.broadcast %cst_28 : f32 to vector<2x1xf32>
    %82 = arith.mulf %80, %81 : vector<2x1xf32>
    %83 = arith.mulf %77, %77 : vector<2x1xf32>
    %84 = arith.subf %82, %83 : vector<2x1xf32>
    %85 = vector.broadcast %77 : vector<2x1xf32> to vector<2x128xf32>
    %86 = arith.subf %73, %85 : vector<2x128xf32>
    %cst_29 = arith.constant 9.99999974E-6 : f32
    %87 = vector.broadcast %cst_29 : f32 to vector<2x1xf32>
    %88 = arith.addf %84, %87 : vector<2x1xf32>
    %89 = math.rsqrt %88 : vector<2x1xf32>
    %90 = vector.broadcast %89 : vector<2x1xf32> to vector<2x128xf32>
    %91 = arith.mulf %86, %90 : vector<2x128xf32>
    %92 = vector.broadcast %4 : vector<1x128xf32> to vector<2x128xf32>
    %93 = arith.mulf %91, %92 : vector<2x128xf32>
    %94 = vector.broadcast %5 : vector<1x128xf32> to vector<2x128xf32>
    %95 = arith.addf %93, %94 : vector<2x128xf32>
    %96 = arith.truncf %95 : vector<2x128xf32> to vector<2x128xbf16>
    %c0_30 = arith.constant 0 : index
    %c0_31 = arith.constant 0 : index
    %97 = vector.load %arg6[%c0_30, %c0_31] : memref<128x128xbf16, #tpu.memory_space<vmem>>, vector<128x128xbf16>
    %cst_32 = arith.constant dense<0.000000e+00> : vector<2x128xf32>
    %98 = tpu.matmul %96, %97, %cst_32 {dimension_numbers = #tpu.dot_dimension_numbers<[1], [0], [0], [1], [0, 0, 1, 1], [], []>} : vector<2x128xbf16>, vector<128x128xbf16>, vector<2x128xf32> -> vector<2x128xf32>
    %99 = vector.broadcast %2 : vector<1x128xf32> to vector<2x128xf32>
    %100 = arith.addf %98, %99 : vector<2x128xf32>
    %cst_33 = arith.constant 0.000000e+00 : f32
    %101 = vector.broadcast %cst_33 : f32 to vector<2x128xf32>
    %102 = arith.maximumf %100, %101 : vector<2x128xf32>
    %103 = arith.truncf %102 : vector<2x128xf32> to vector<2x128xbf16>
    %c0_34 = arith.constant 0 : index
    %c0_35 = arith.constant 0 : index
    %104 = vector.load %arg7[%c0_34, %c0_35] : memref<128x128xbf16, #tpu.memory_space<vmem>>, vector<128x128xbf16>
    %cst_36 = arith.constant dense<0.000000e+00> : vector<2x128xf32>
    %105 = tpu.matmul %103, %104, %cst_36 {dimension_numbers = #tpu.dot_dimension_numbers<[1], [0], [0], [1], [0, 0, 1, 1], [], []>} : vector<2x128xbf16>, vector<128x128xbf16>, vector<2x128xf32> -> vector<2x128xf32>
    %106 = vector.broadcast %3 : vector<1x128xf32> to vector<2x128xf32>
    %107 = arith.addf %105, %106 : vector<2x128xf32>
    %108 = arith.addf %95, %107 : vector<2x128xf32>
    %cst_37 = arith.constant dense<0.000000e+00> : vector<2xf32>
    %109 = vector.multi_reduction <add>, %108, %cst_37 [1] : vector<2x128xf32> to vector<2xf32>
    %110 = vector.shape_cast %109 : vector<2xf32> to vector<2x1xf32>
    %cst_38 = arith.constant 3.125000e-02 : f32
    %111 = vector.broadcast %cst_38 : f32 to vector<2x1xf32>
    %112 = arith.mulf %110, %111 : vector<2x1xf32>
    %113 = arith.mulf %108, %108 : vector<2x128xf32>
    %cst_39 = arith.constant dense<0.000000e+00> : vector<2xf32>
    %114 = vector.multi_reduction <add>, %113, %cst_39 [1] : vector<2x128xf32> to vector<2xf32>
    %115 = vector.shape_cast %114 : vector<2xf32> to vector<2x1xf32>
    %cst_40 = arith.constant 3.125000e-02 : f32
    %116 = vector.broadcast %cst_40 : f32 to vector<2x1xf32>
    %117 = arith.mulf %115, %116 : vector<2x1xf32>
    %118 = arith.mulf %112, %112 : vector<2x1xf32>
    %119 = arith.subf %117, %118 : vector<2x1xf32>
    %120 = vector.broadcast %112 : vector<2x1xf32> to vector<2x128xf32>
    %121 = arith.subf %108, %120 : vector<2x128xf32>
    %cst_41 = arith.constant 9.99999974E-6 : f32
    %122 = vector.broadcast %cst_41 : f32 to vector<2x1xf32>
    %123 = arith.addf %119, %122 : vector<2x1xf32>
    %124 = math.rsqrt %123 : vector<2x1xf32>
    %125 = vector.broadcast %124 : vector<2x1xf32> to vector<2x128xf32>
    %126 = arith.mulf %121, %125 : vector<2x128xf32>
    %127 = vector.broadcast %6 : vector<1x128xf32> to vector<2x128xf32>
    %128 = arith.mulf %126, %127 : vector<2x128xf32>
    %129 = vector.broadcast %7 : vector<1x128xf32> to vector<2x128xf32>
    %130 = arith.addf %128, %129 : vector<2x128xf32>
    %131 = arith.truncf %130 : vector<2x128xf32> to vector<2x128xbf16>
    %c0_42 = arith.constant 0 : index
    %c0_43 = arith.constant 0 : index
    %132 = vector.load %arg8[%c0_42, %c0_43] : memref<128x128xbf16, #tpu.memory_space<vmem>>, vector<128x128xbf16>
    %cst_44 = arith.constant dense<0.000000e+00> : vector<2x128xf32>
    %133 = tpu.matmul %131, %132, %cst_44 {dimension_numbers = #tpu.dot_dimension_numbers<[1], [0], [0], [1], [0, 0, 1, 1], [], []>} : vector<2x128xbf16>, vector<128x128xbf16>, vector<2x128xf32> -> vector<2x128xf32>
    %134 = vector.broadcast %8 : vector<1x128xf32> to vector<2x128xf32>
    %135 = arith.addf %133, %134 : vector<2x128xf32>
    %cst_45 = arith.constant 0.000000e+00 : f32
    %136 = vector.broadcast %cst_45 : f32 to vector<4x128xf32>
    %137 = tpu.concatenate %135, %130, %136 in 0 : vector<2x128xf32>, vector<2x128xf32>, vector<4x128xf32> -> vector<8x128xf32>
    %c0_46 = arith.constant 0 : index
    %c0_47 = arith.constant 0 : index
    %138 = vector.load %arg10[%c0_46, %c0_47] : memref<8x128xf32, #tpu.memory_space<vmem>>, vector<8x128xf32>
    tpu.vector_store %arg10[%c0_46, %c0_47], %137 {strides = array<i32>} : memref<8x128xf32, #tpu.memory_space<vmem>>, vector<8x128xf32>,
    return
  }
}

</mosaic_0001>

<bundles_post_ra>
// kernel: classifier_forward.1
= control target key start
LH: loop header
LB: loop body
LE: loop exit
PB: predicated region body
PF: predicated region fallthrough
CT: control target
= control target key end

     0   :  { %15 = vsyncpa [#allocation3], 0  ;;  %s1534_s0 = inlined_call_operand.vmem [shape: s32[16,1], index: 0, kind: input, shape index: {}]   ;;  %s1535_s1 = inlined_call_operand.vmem [shape: f32[1,16], index: 1, kind: input, shape index: {}]   ;;  %s1536_s2 = inlined_call_operand.hbm [shape: bf16[128,128], index: 2, kind: input, shape index: {}]   ;;  %s1537_s3 = inlined_call_operand.hbm [shape: bf16[128,384], index: 3, kind: input, shape index: {}]   ;;  %s1538_s4 = inlined_call_operand.vmem [shape: f32[1,384], index: 4, kind: input, shape index: {}]   ;;  %s1539_s5 = inlined_call_operand.hbm [shape: bf16[128,128], index: 5, kind: input, shape index: {}]   ;;  %s1540_s6 = inlined_call_operand.hbm [shape: bf16[128,128], index: 6, kind: input, shape index: {}]   ;;  %s1541_s7 = inlined_call_operand.hbm [shape: bf16[128,128], index: 7, kind: input, shape index: {}]   ;;  %s1542_s8 = inlined_call_operand.hbm [shape: bf16[128,128], index: 8, kind: input, shape index: {}]   ;;  %s1543_s9 = inlined_call_operand.vmem [shape: f32[8,128], index: 9, kind: input, shape index: {}]   ;;  %s1544_s10 = inlined_call_operand.vmem [shape: f32[8,128], index: 10, kind: output, shape index: {}]  }
   0x1   :  { %16 = vsyncpa [#allocation5], 0 }
   0x2   :  { %17 = vsyncpa [#allocation8], 0  ;;  %s40_s15 = sshll.u32 %s1537_s3, 4  ;;  %s41_s15 = int_to_ptr.hbm [resolvable:$true] %s40_s15 }
   0x3   :  { %18 = vsyncpa [#allocation11], 0  ;;  %s1403_s16 = smov [#allocation4]   ;;  %s1404_s18 = smov 192  }
   0x4   :  { %s42_s17 = sshll.u32 %s1403_s16, 4  ;;  %s1405_s19 = smov 12   ;;  %s43_s17 = int_to_ptr.vmem [resolvable:$true] %s42_s17 }
   0x5   :  { %48 = dma.hbm_to_vmem [thread:$0]  %s41_s15, 3072, %s43_s17, [#allocation5], %s1404_s18, %s1404_s18, %s1405_s19  }
   0x6   :  { %s68_s22 = sshll.u32 %s1540_s6, 4  ;;  %s1406_s23 = smov [#allocation7]   ;;  %s69_s22 = int_to_ptr.hbm [resolvable:$true] %s68_s22 }
   0x7   :  { %s70_s24 = sshll.u32 %s1406_s23, 4  ;;  %s27_s27 = sshll.u32 %s1536_s2, 4  ;;  %s71_s24 = int_to_ptr.vmem [resolvable:$true] %s70_s24  ;;  %s28_s27 = int_to_ptr.hbm [resolvable:$true] %s27_s27 }
   0x8   :  { %s1407_s3 = smov 64   ;;  %s1408_s28 = smov 4  }
   0x9   :  { %76 = dma.hbm_to_vmem [thread:$0]  %s69_s22, 1024, %s71_s24, [#allocation8], %s1407_s3, %s1407_s3, %s1408_s28  }
   0xa   :  { %s55_s11 = sshll.u32 %s1539_s5, 4  ;;  %s1409_s12 = smov [#allocation2]   ;;  %s56_s11 = int_to_ptr.hbm [resolvable:$true] %s55_s11 }
   0xb   :  { %s29_s13 = sshll.u32 %s1409_s12, 4  ;;  %s1410_s6 = smov [#allocation6]   ;;  %s30_s13 = int_to_ptr.vmem [resolvable:$true] %s29_s13 }
   0xc   :  { %35 = dma.hbm_to_vmem [thread:$0]  %s28_s27, 1024, %s30_s13, [#allocation3], %s1407_s3, %s1407_s3, %s1408_s28  }
   0xd   :  { %s57_s14 = sshll.u32 %s1410_s6, 4  ;;  %s81_s2 = sshll.u32 %s1541_s7, 4  ;;  %s58_s14 = int_to_ptr.vmem [resolvable:$true] %s57_s14  ;;  %s82_s2 = int_to_ptr.hbm [resolvable:$true] %s81_s2 }
   0xe   :  { %63 = dma.hbm_to_vmem [thread:$0]  %s56_s11, 1024, %s58_s14, [#allocation5], %s1407_s3, %s1407_s3, %s1408_s28  }
   0xf   :  { %s94_s19 = sshll.u32 %s1542_s8, 4  ;;  %s1411_s20 = smov [#allocation9]   ;;  %s95_s19 = int_to_ptr.hbm [resolvable:$true] %s94_s19 }
  0x10   :  { %s83_s5 = sshll.u32 %s1411_s20, 4  ;;  %s1412_s21 = smov [#allocation10]   ;;  %s84_s5 = int_to_ptr.vmem [resolvable:$true] %s83_s5 }
  0x11   :  { %89 = dma.hbm_to_vmem [thread:$0]  %s82_s2, 1024, %s84_s5, [#allocation8], %s1407_s3, %s1407_s3, %s1408_s28  }
  0x12   :  { %s96_s22 = sshll.u32 %s1412_s21, 4  ;;  %s97_s22 = int_to_ptr.vmem [resolvable:$true] %s96_s22 }
  0x13   :  { %102 = dma.hbm_to_vmem [thread:$0]  %s95_s19, 1024, %s97_s22, [#allocation11], %s1407_s3, %s1407_s3, %s1408_s28  }
  0x14   :  { %1395 = dma.done.wait [#allocation3], 1024  }
  0x15   :  { %1396 = vsyncadd [#allocation3], 4294966272 }
  0x16   :  { %1397 = dma.done.wait [#allocation5], 4096  }
  0x17   :  { %1398 = vsyncadd [#allocation5], 4294963200 }
  0x18   :  { %1399 = dma.done.wait [#allocation8], 2048  }
  0x19   :  { %1400 = vsyncadd [#allocation8], 4294965248 }
  0x1a   :  { %1401 = dma.done.wait [#allocation11], 1024  }
  0x1b   :  { %1402 = vsyncadd [#allocation11], 4294966272  ;;  %v1413_v0 = vmov 0   ;;  %v132_v1 = vld [vmem:[%s1534_s0] sm:$0xff]  ;;  %v1173_v2 = vld [vmem:[#allocation2 + $0x38] sm:$0xff]  ;;  %v130_v57 = vlaneseq  ;;  %vm478_vm7 = vcmask 123904  }
  0x1c   :  { %1242 = vset.pattern.permute.xlu0 %v1413_v0  ;;  %211 = vmatpush.bf16.msra.mxu0 %v1173_v2  ;;  %v1172_v3 = vld [vmem:[#allocation2 + $0x30] sm:$0xff]  ;;  %v133_v4 = vld [vmem:[%s1534_s0 + $0x8] sm:$0xff]  ;;  %v1170_v6 = vld [vmem:[#allocation2 + $0x20] sm:$0xff]  ;;  %v1414_v60 = vmov 1.0|1.0   ;;  %vm490_vm8 = vcmask 130048  }
  0x1d   :  { %135 = vperm.xlu0 %1242, %v132_v1   ;;  %v1171_v5 = vld [vmem:[#allocation2 + $0x28] sm:$0xff]  ;;  %v1169_v7 = vld [vmem:[#allocation2 + $0x18] sm:$0xff]  ;;  %v1168_v8 = vld [vmem:[#allocation2 + $0x10] sm:$0xff]  ;;  %v1496_v58 = vand.u32 127, %v130_v57  ;;  %vm594_vm9 = vcmask 1041408  }
  0x1e   :  { %v1167_v9 = vld [vmem:[#allocation2 + $0x8] sm:$0xff]  ;;  %v1166_v10 = vld [vmem:[#allocation2] sm:$0xff]  ;;  %v1196_v12 = vld [vmem:[#allocation4 + $0xb0] sm:$0xf0] }
  0x1f   :  { %v1027_v11 = vld [vmem:[#allocation4 + $0xa8] sm:$0xf]  ;;  %v1195_v13 = vld [vmem:[#allocation4 + $0xac] sm:$0xf]  ;;  %v1029_v15 = vld [vmem:[#allocation4 + $0xb4] sm:$0xf0] }
  0x20   :  { %212 = vmatpush.bf16.msra.mxu0 %v1172_v3  ;;  %v1028_v14 = vor.u32 %v1196_v12, %v1027_v11  ;;  %v1035_v16 = vld [vmem:[#allocation4 + $0xb0] sm:$0xf]  ;;  %v1197_v17 = vld [vmem:[#allocation4 + $0xb8] sm:$0xf0]  ;;  %v1032_v18 = vor.u32 %v1195_v13, %v1029_v15  ;;  %v1192_v22 = vld [vmem:[#allocation4 + $0x94] sm:$0xf] }
  0x21   :  { %v1036_v19 = vor.u32 %v1197_v17, %v1035_v16  ;;  %v1015_v20 = vld [vmem:[#allocation4 + $0x90] sm:$0xf]  ;;  %v1193_v21 = vld [vmem:[#allocation4 + $0x98] sm:$0xf0]  ;;  %v1017_v24 = vld [vmem:[#allocation4 + $0x9c] sm:$0xf0] }
  0x22   :  { %394 = vmatpush.bf16.msra.mxu1 %v1028_v14  ;;  %v1016_v23 = vor.u32 %v1193_v21, %v1015_v20  ;;  %v1023_v25 = vld [vmem:[#allocation4 + $0x98] sm:$0xf]  ;;  %v1194_v26 = vld [vmem:[#allocation4 + $0xa0] sm:$0xf0]  ;;  %407 = vmatpush.bf16.msra.mxu2 %v1032_v18  ;;  %v1020_v27 = vor.u32 %v1192_v22, %v1017_v24  ;;  %v1189_v31 = vld [vmem:[#allocation4 + $0x7c] sm:$0xf] }
  0x23   :  { %421 = vmatpush.bf16.msra.mxu3 %v1036_v19  ;;  %v1024_v28 = vor.u32 %v1194_v26, %v1023_v25  ;;  %v1003_v29 = vld [vmem:[#allocation4 + $0x78] sm:$0xf]  ;;  %v1190_v30 = vld [vmem:[#allocation4 + $0x80] sm:$0xf0]  ;;  %v1005_v32 = vld [vmem:[#allocation4 + $0x84] sm:$0xf0] }
  0x24   :  { %213 = vmatpush.bf16.msra.mxu0 %v1171_v5  ;;  %v1011_v33 = vld [vmem:[#allocation4 + $0x80] sm:$0xf]  ;;  %v1191_v34 = vld [vmem:[#allocation4 + $0x88] sm:$0xf0]  ;;  %v1004_v35 = vor.u32 %v1190_v30, %v1003_v29  ;;  %v1008_v36 = vor.u32 %v1189_v31, %v1005_v32  ;;  %v1186_v40 = vld [vmem:[#allocation4 + $0x64] sm:$0xf] }
  0x25   :  { %138 = vperm.xlu0 %1242, %v133_v4   ;;  %v1012_v37 = vor.u32 %v1191_v34, %v1011_v33  ;;  %v991_v38 = vld [vmem:[#allocation4 + $0x60] sm:$0xf]  ;;  %v1187_v39 = vld [vmem:[#allocation4 + $0x68] sm:$0xf0]  ;;  %v993_v41 = vld [vmem:[#allocation4 + $0x6c] sm:$0xf0] }
  0x26   :  { %395 = vmatpush.bf16.msra.mxu1 %v1016_v23  ;;  %408 = vmatpush.bf16.msra.mxu2 %v1020_v27  ;;  %v999_v42 = vld [vmem:[#allocation4 + $0x68] sm:$0xf]  ;;  %v1188_v43 = vld [vmem:[#allocation4 + $0x70] sm:$0xf0]  ;;  %v992_v44 = vor.u32 %v1187_v39, %v991_v38  ;;  %v996_v45 = vor.u32 %v1186_v40, %v993_v41  ;;  %v1183_v49 = vld [vmem:[#allocation4 + $0x4c] sm:$0xf] }
  0x27   :  { %422 = vmatpush.bf16.msra.mxu3 %v1024_v28  ;;  %v1000_v46 = vor.u32 %v1188_v43, %v999_v42  ;;  %v979_v47 = vld [vmem:[#allocation4 + $0x48] sm:$0xf]  ;;  %v1184_v48 = vld [vmem:[#allocation4 + $0x50] sm:$0xf0]  ;;  %v981_v50 = vld [vmem:[#allocation4 + $0x54] sm:$0xf0] }
  0x28   :  { %214 = vmatpush.bf16.msra.mxu0 %v1170_v6  ;;  %v987_v51 = vld [vmem:[#allocation4 + $0x50] sm:$0xf]  ;;  %v1185_v52 = vld [vmem:[#allocation4 + $0x58] sm:$0xf0]  ;;  %v980_v53 = vor.u32 %v1184_v48, %v979_v47  ;;  %v984_v54 = vor.u32 %v1183_v49, %v981_v50  ;;  %v1180_v63 = vld [vmem:[#allocation4 + $0x34] sm:$0xf] }
  0x29   :  { %v988_v55 = vor.u32 %v1185_v52, %v987_v51  ;;  %v967_v61 = vld [vmem:[#allocation4 + $0x30] sm:$0xf]  ;;  %v1181_v62 = vld [vmem:[#allocation4 + $0x38] sm:$0xf0]  ;;  %v969_v2 = vld [vmem:[#allocation4 + $0x3c] sm:$0xf0] }
  0x2a   :  { %396 = vmatpush.bf16.msra.mxu1 %v1004_v35  ;;  %409 = vmatpush.bf16.msra.mxu2 %v1008_v36  ;;  %v968_v1 = vor.u32 %v1181_v62, %v967_v61  ;;  %v975_v3 = vld [vmem:[#allocation4 + $0x38] sm:$0xf]  ;;  %v1182_v4 = vld [vmem:[#allocation4 + $0x40] sm:$0xf0]  ;;  %v972_v5 = vor.u32 %v1180_v63, %v969_v2  ;;  %v957_v11 = vld [vmem:[#allocation4 + $0x24] sm:$0xf0] }
  0x2b   :  { %423 = vmatpush.bf16.msra.mxu3 %v1012_v37  ;;  %v976_v6 = vor.u32 %v1182_v4, %v975_v3  ;;  %v963_v12 = vld [vmem:[#allocation4 + $0x20] sm:$0xf]  ;;  %v1179_v13 = vld [vmem:[#allocation4 + $0x28] sm:$0xf0]  ;;  %v1174_v18 = vld [vmem:[#allocation4 + $0x4] sm:$0xf] }
  0x2c   :  { %215 = vmatpush.bf16.msra.mxu0 %v1169_v7  ;;  %v955_v7 = vld [vmem:[#allocation4 + $0x18] sm:$0xf]  ;;  %v964_v15 = vor.u32 %v1179_v13, %v963_v12  ;;  %v943_v16 = vld [vmem:[#allocation4] sm:$0xf]  ;;  %v1175_v17 = vld [vmem:[#allocation4 + $0x8] sm:$0xf0] }
  0x2d   :  { %v944_v19 = vor.u32 %v1175_v17, %v943_v16  ;;  %v945_v20 = vld [vmem:[#allocation4 + $0xc] sm:$0xf0]  ;;  %v951_v21 = vld [vmem:[#allocation4 + $0x8] sm:$0xf]  ;;  %v1176_v22 = vld [vmem:[#allocation4 + $0x10] sm:$0xf0] }
  0x2e   :  { %397 = vmatpush.bf16.msra.mxu1 %v992_v44  ;;  %410 = vmatpush.bf16.msra.mxu2 %v996_v45  ;;  %v948_v23 = vor.u32 %v1174_v18, %v945_v20  ;;  %v952_v24 = vor.u32 %v1176_v22, %v951_v21  ;;  %v258_v32 = vld [vmem:[%s1538_s4] sm:$0x7]  ;;  %v462_v47 = vand.u32 1, %v1496_v58  ;;  %v1200_v61 = vld [vmem:[#allocation6 + $0x10] sm:$0xff]  ;;  %v1199_v63 = vld [vmem:[#allocation6 + $0x8] sm:$0xff] }
  0x2f   :  { %424 = vmatpush.bf16.msra.mxu3 %v1000_v46  ;;  %v261_v33 = vperm.slane %v258_v32, 1  ;;  %v262_v34 = vperm.slane %v258_v32, 2  ;;  %v260_v39 = vperm.slane %v258_v32, 0  ;;  %v471_v43 = vld [vmem:[%s1535_s1] sm:$0x1]  ;;  %v457_v46 = vshrl.u32 %v130_v57, 7 }
  0x30   :  { %216 = vmatpush.bf16.msra.mxu0 %v1168_v8  ;;  %v1178_v8 = vld [vmem:[#allocation4 + $0x20] sm:$0xf0]  ;;  %vm472_vm3 = vcmp.gt.f32.partialorder %v471_v43, 0.0  ;;  %v1204_v57 = vld [vmem:[#allocation6 + $0x30] sm:$0xff]  ;;  %v1211_v17 = vld [vmem:[#allocation7 + $0x28] sm:$0xff] }
  0x31   :  { %v473_v44 = vsel %vm472_vm3, 1, %v1413_v0  ;;  %vm470_vm5 = vcmp.eq.s32.totalorder %v462_v47, %v457_v46  ;;  %v1198_v3 = vld [vmem:[#allocation6] sm:$0xff]  ;;  %v1212_v16 = vld [vmem:[#allocation7 + $0x30] sm:$0xff]  ;;  %v1207_v22 = vld [vmem:[#allocation7 + $0x8] sm:$0xff] }
  0x32   :  { %398 = vmatpush.bf16.msra.mxu1 %v980_v53  ;;  %411 = vmatpush.bf16.msra.mxu2 %v984_v54  ;;  %v474_v45 = vperm.slane %v473_v44, 0  ;;  %v1210_v18 = vld [vmem:[#allocation7 + $0x20] sm:$0xff]  ;;  %v1208_v20 = vld [vmem:[#allocation7 + $0x10] sm:$0xff]  ;;  %v1219_v32 = vld [vmem:[#allocation9 + $0x28] sm:$0xff] }
  0x33   :  { %425 = vmatpush.bf16.msra.mxu3 %v988_v55 }
  0x34   :  { %217 = vmatpush.bf16.msra.mxu0 %v1167_v9  ;;  %v1177_v9 = vld [vmem:[#allocation4 + $0x1c] sm:$0xf]  ;;  %vm475_vm4 = vcmp.eq.s32.totalorder %v474_v45, 1 }
  0x35   :  { %v960_v14 = vor.u32 %v1177_v9, %v957_v11  ;;  %vm476_vm6 = vmand %vm470_vm5, %vm475_vm4 }
  0x36   :  { %399 = vmatpush.bf16.msra.mxu1 %v968_v1  ;;  %412 = vmatpush.bf16.msra.mxu2 %v972_v5 }
  0x37   :  { %426 = vmatpush.bf16.msra.mxu3 %v976_v6  ;;  %v1515_v6 = vld [vmem:[%s1543_s9] sm:$0xff] }
  0x38   :  { %218 = vmatpush.bf16.msra.mxu0 %v1166_v10  ;;  %v956_v10 = vor.u32 %v1178_v8, %v955_v7  ;;  %v531_v7 = vperm.slane %v1515_v6, 0  ;;  %v619_v43 = vperm.slane %v1515_v6, 3  ;;  %v621_v46 = vperm.slane %v1515_v6, 4 }
  0x3a   :  { %400 = vmatpush.bf16.msra.mxu1 %v956_v10  ;;  %413 = vmatpush.bf16.msra.mxu2 %v960_v14 }
  0x3b   :  { %427 = vmatpush.bf16.msra.mxu3 %v964_v15  ;;  %v1213_v15 = vld [vmem:[#allocation7 + $0x38] sm:$0xff] }
  0x3e   :  { %401 = vmatpush.bf16.msra.mxu1 %v944_v19  ;;  %414 = vmatpush.bf16.msra.mxu2 %v948_v23  ;;  %v1209_v19 = vld [vmem:[#allocation7 + $0x18] sm:$0xff]  ;;  %v1206_v23 = vld [vmem:[#allocation7] sm:$0xff] }
  0x3f   :  { %428 = vmatpush.bf16.msra.mxu3 %v952_v24 }
  0x43   :  { %689 = vmatpush.bf16.msrb.mxu3 %v1213_v15 }
  0x47   :  { %690 = vmatpush.bf16.msrb.mxu3 %v1212_v16 }
  0x4b   :  { %691 = vmatpush.bf16.msrb.mxu3 %v1211_v17 }
  0x4f   :  { %692 = vmatpush.bf16.msrb.mxu3 %v1210_v18 }
  0x53   :  { %693 = vmatpush.bf16.msrb.mxu3 %v1209_v19 }
  0x57   :  { %694 = vmatpush.bf16.msrb.mxu3 %v1208_v20 }
  0x5b   :  { %695 = vmatpush.bf16.msrb.mxu3 %v1207_v22 }
  0x5f   :  { %696 = vmatpush.bf16.msrb.mxu3 %v1206_v23 }
  0x8f   :  { %v136_v56 = vpop.permute.xlu0 %135 }
  0x90   :  { %vm140_vm0 = vcmp.eq.s32.totalorder %v136_v56, %v1496_v58  ;;  %v1205_v56 = vld [vmem:[#allocation6 + $0x38] sm:$0xff] }
  0x91   :  { %580 = vmatpush.bf16.msrb.mxu2 %v1205_v56 }
  0x95   :  { %581 = vmatpush.bf16.msrb.mxu2 %v1204_v57  ;;  %v720_v57 = vperm.slane %v1515_v6, 2 }
  0x97   :  { %v139_v59 = vpop.permute.xlu0 %138 }
  0x98   :  { %vm141_vm1 = vcmp.eq.s32.totalorder %v139_v59, %v1496_v58  ;;  %v1203_v58 = vld [vmem:[#allocation6 + $0x28] sm:$0xff]  ;;  %v1202_v59 = vld [vmem:[#allocation6 + $0x20] sm:$0xff] }
  0x99   :  { %vm939_vm2 = vmpackc.low %vm141_vm1, %vm140_vm0  ;;  %582 = vmatpush.bf16.msrb.mxu2 %v1203_v58  ;;  %vm894_vm0 = vcmask 1043456  }
  0x9a   :  { %940 = vmatmul.msk.bf16.vlgmr.msra.gmra.mxu0 %vm939_vm2, %v1414_v60  ;;  %v1201_v60 = vld [vmem:[#allocation6 + $0x18] sm:$0xff] }
  0x9d   :  { %583 = vmatpush.bf16.msrb.mxu2 %v1202_v59 }
  0xa1   :  { %584 = vmatpush.bf16.msrb.mxu2 %v1201_v60 }
  0xa5   :  { %585 = vmatpush.bf16.msrb.mxu2 %v1200_v61 }
  0xa9   :  { %586 = vmatpush.bf16.msrb.mxu2 %v1199_v63 }
  0xad   :  { %587 = vmatpush.bf16.msrb.mxu2 %v1198_v3  ;;  %v1228_v3 = vld [vmem:[#allocation10 + $0x30] sm:$0xff] }
 0x117   :  { %v1500_v25 = vpop.f32.mrf.mxu0 }
 0x11f   :  { %v222_v26 = vpop.f32.mrf.mxu0 }
 0x120   :  { %v225_v27 = vpack.c.bf16 %v222_v26, %v1500_v25 }
 0x122   :  { %402 = vmatmul.bf16.vlgmr.msra.gmra.mxu1 %v225_v27  ;;  %415 = vmatmul.bf16.vlgmr.msra.gmra.mxu2 %v225_v27 }
 0x123   :  { %429 = vmatmul.bf16.vlgmr.msra.gmra.mxu3 %v225_v27 }
 0x19f   :  { %v403_v28 = vpop.f32.mrf.mxu1 }
 0x1a0   :  { %v404_v42 = vadd.f32 %v403_v28, %v260_v39  ;;  %v1221_v28 = vld [vmem:[#allocation9 + $0x38] sm:$0xff]  ;;  %v1216_v39 = vld [vmem:[#allocation9 + $0x10] sm:$0xff] }
 0x1a5   :  { %v416_v29 = vpop.f32.mrf.mxu2 }
 0x1a6   :  { %v430_v30 = vpop.f32.mrf.mxu3  ;;  %v417_v41 = vadd.f32 %v416_v29, %v261_v33 }
 0x1a7   :  { %v405_v31 = vpop.f32.mrf.mxu1  ;;  %v431_v40 = vadd.f32 %v430_v30, %v262_v34  ;;  %v1220_v30 = vld [vmem:[#allocation9 + $0x30] sm:$0xff] }
 0x1ad   :  { %v418_v35 = vpop.f32.mrf.mxu2 }
 0x1ae   :  { %v419_v36 = vadd.f32 %v418_v35, %v261_v33  ;;  %v432_v37 = vpop.f32.mrf.mxu3  ;;  %v1218_v33 = vld [vmem:[#allocation9 + $0x20] sm:$0xff] }
 0x1af   :  { %v433_v38 = vadd.f32 %v432_v37, %v262_v34 }
 0x1b0   :  { %449 = vmatpush.xpose.msrb.mxu0 %v419_v36  ;;  %v1217_v36 = vld [vmem:[#allocation9 + $0x18] sm:$0xff] }
 0x1b1   :  { %508 = vmatpush.msrb.mxu1 %v433_v38 }
 0x1b3   :  { %509 = vmatpush.msrb.mxu1 %v431_v40 }
 0x1b4   :  { %450 = vmatpush.xpose.msrb.mxu0 %v417_v41 }
 0x1b7   :  { %451 = vmatmul.f32.vlgmr.msrb.gmra.mxu0 %v404_v42 }
 0x1b8   :  { %769 = vmatpush.bf16.msra.mxu0 %v1221_v28  ;;  %v809_v28 = vperm.slane %v1515_v6, 6 }
 0x1bc   :  { %770 = vmatpush.bf16.msra.mxu0 %v1220_v30 }
 0x1c0   :  { %771 = vmatpush.bf16.msra.mxu0 %v1219_v32  ;;  %v828_v32 = vperm.slane %v1515_v6, 7 }
 0x1c4   :  { %772 = vmatpush.bf16.msra.mxu0 %v1218_v33 }
 0x1c8   :  { %773 = vmatpush.bf16.msra.mxu0 %v1217_v36 }
 0x1cc   :  { %774 = vmatpush.bf16.msra.mxu0 %v1216_v39 }
 0x234   :  { %v452_v48 = vpop.f32.mrf.mxu0 }
 0x235   :  { %v455_v49 = vmul.f32 0.17677669, %v452_v48 }
 0x237   :  { %v477_v50 = vsel %vm476_vm6, %v455_v49, -1e+09 }
 0x238   :  { %v479_v51 = vsel %vm478_vm7, %v477_v50, -inf }
 0x239   :  { %480 = vmax.xlane.f32.xlu1 %v479_v51  ;;  %v1214_v51 = vld [vmem:[#allocation9] sm:$0xff] }
 0x2ac   :  { %v481_v52 = vpop.xlane.xlu1 %480 }
 0x2ad   :  { %v482_v53 = vsub.f32 %v477_v50, %v481_v52  ;;  %v1215_v50 = vld [vmem:[#allocation9 + $0x8] sm:$0xff]  ;;  %v640_v52 = vperm.slane %v1515_v6, 1 }
 0x2ae   :  { %775 = vmatpush.bf16.msra.mxu0 %v1215_v50 }
 0x2af   :  { %v483_v54 = vmul.f32 1.442695, %v482_v53 }
 0x2b1   :  { %1243 = vpow2.f32 %v483_v54 }
 0x2b2   :  { %776 = vmatpush.bf16.msra.mxu0 %v1214_v51 }
 0x2b7   :  { %v1244_v55 = vpop.eup %1243 }
 0x2b8   :  { %v485_v0 = vsel %vm478_vm7, %v1244_v55, 0.0 }
 0x2b9   :  { %486 = vadd.xlane.f32.xlu1 %v485_v0 }
 0x32c   :  { %v487_v62 = vpop.xlane.xlu1 %486 }
 0x32d   :  { %1245 = vrcp.f32 %v487_v62 }
 0x333   :  { %v1246_v1 = vpop.eup %1245 }
 0x334   :  { %v489_v2 = vmul.f32 %v1246_v1, %v1244_v55 }
 0x336   :  { %1037 = vmatmul.msk.f32.vlgmr.msrb.gmra.mxu1 %vm490_vm8, %v489_v2  ;;  %v1229_v2 = vld [vmem:[#allocation10 + $0x38] sm:$0xff] }
 0x337   :  { %877 = vmatpush.bf16.msra.mxu1 %v1229_v2 }
 0x33b   :  { %878 = vmatpush.bf16.msra.mxu1 %v1228_v3 }
 0x3b3   :  { %v511_v4 = vpop.f32.mrf.mxu1 }
 0x3b4   :  { %v514_v5 = vpack.c.bf16 %v511_v4, %v511_v4  ;;  %v1227_v4 = vld [vmem:[#allocation10 + $0x28] sm:$0xff] }
 0x3b5   :  { %879 = vmatpush.bf16.msra.mxu1 %v1227_v4 }
 0x3b6   :  { %588 = vmatmul.bf16.vlgmr.msrb.gmra.mxu2 %v514_v5  ;;  %v1226_v5 = vld [vmem:[#allocation10 + $0x20] sm:$0xff] }
 0x3b9   :  { %880 = vmatpush.bf16.msra.mxu1 %v1226_v5 }
 0x439   :  { %v589_v8 = vpop.f32.mrf.mxu2 }
 0x43a   :  { %v590_v9 = vadd.f32 %v589_v8, %v531_v7  ;;  %v1225_v7 = vld [vmem:[#allocation10 + $0x18] sm:$0xff]  ;;  %v1224_v8 = vld [vmem:[#allocation10 + $0x10] sm:$0xff] }
 0x43b   :  { %881 = vmatpush.bf16.msra.mxu1 %v1225_v7 }
 0x43c   :  { %v593_v10 = vadd.f32 %v590_v9, %v1500_v25  ;;  %v1223_v9 = vld [vmem:[#allocation10 + $0x8] sm:$0xff] }
 0x43e   :  { %v595_v11 = vsel %vm594_vm9, %v593_v10, 0.0  ;;  %v599_v13 = vmul.f32 %v593_v10, %v593_v10 }
 0x43f   :  { %596 = vadd.xlane.f32.xlu2 %v595_v11  ;;  %882 = vmatpush.bf16.msra.mxu1 %v1224_v8 }
 0x440   :  { %v600_v14 = vsel %vm594_vm9, %v599_v13, 0.0 }
 0x441   :  { %v591_v12 = vpop.f32.mrf.mxu2 }
 0x443   :  { %883 = vmatpush.bf16.msra.mxu1 %v1223_v9 }
 0x447   :  { %601 = vadd.xlane.f32.xlu2 %v600_v14 }
 0x4b2   :  { %v597_v21 = vpop.xlane.xlu2 %596 }
 0x4b3   :  { %v598_v24 = vmul.f32 0.03125, %v597_v21 }
 0x4b5   :  { %v604_v26 = vmul.f32 %v598_v24, %v598_v24  ;;  %v606_v42 = vsub.f32 %v593_v10, %v598_v24  ;;  %v1222_v10 = vld [vmem:[#allocation10] sm:$0xff] }
 0x4b6   :  { %884 = vmatpush.bf16.msra.mxu1 %v1222_v10 }
 0x4ba   :  { %v602_v25 = vpop.xlane.xlu2 %601 }
 0x4bb   :  { %v603_v27 = vmul.f32 0.03125, %v602_v25  ;;  %v807_v25 = vperm.slane %v1515_v6, 5 }
 0x4bd   :  { %v605_v29 = vsub.f32 %v603_v27, %v604_v26 }
 0x4bf   :  { %v607_v31 = vadd.f32 1e-05, %v605_v29 }
 0x4c1   :  { %1247 = vrsqrt.f32 %v607_v31  ;;  %vm614_vm11 = vweird.f32 %v607_v31 }
 0x4c7   :  { %v1248_v34 = vpop.eup %1247 }
 0x4c8   :  { %v609_v35 = vmul.f32 %v1248_v34, %v607_v31  ;;  %vm615_vm10 = vweird.f32 %v1248_v34 }
 0x4c9   :  { %vm616_vm12 = vmor %vm614_vm11, %vm615_vm10 }
 0x4ca   :  { %v610_v37 = vmul.f32 %v1248_v34, %v609_v35 }
 0x4cc   :  { %v611_v38 = vmul.f32 0.5, %v610_v37 }
 0x4ce   :  { %v612_v40 = vsub.f32 1.5, %v611_v38 }
 0x4d0   :  { %v613_v41 = vmul.f32 %v1248_v34, %v612_v40 }
 0x4d2   :  { %v617_v44 = vsel %vm616_vm12, %v1248_v34, %v613_v41 }
 0x4d3   :  { %v618_v45 = vmul.f32 %v617_v44, %v606_v42 }
 0x4d5   :  { %v620_v47 = vmul.f32 %v619_v43, %v618_v45 }
 0x4d7   :  { %v622_v48 = vadd.f32 %v621_v46, %v620_v47 }
 0x4d9   :  { %v623_v49 = vpack.c.bf16 %v622_v48, %v622_v48 }
 0x4db   :  { %697 = vmatmul.bf16.vlgmr.msrb.gmra.mxu3 %v623_v49 }
 0x55e   :  { %v698_v53 = vpop.f32.mrf.mxu3 }
 0x55f   :  { %v699_v54 = vadd.f32 %v698_v53, %v640_v52 }
 0x561   :  { %v702_v55 = vmax.f32 %v699_v54, 0.0 }
 0x563   :  { %v703_v0 = vpack.c.bf16 %v702_v55, %v702_v55 }
 0x565   :  { %777 = vmatmul.bf16.vlgmr.msra.gmra.mxu0 %v703_v0 }
 0x566   :  { %v700_v56 = vpop.f32.mrf.mxu3 }
 0x5e2   :  { %v778_v58 = vpop.f32.mrf.mxu0 }
 0x5e3   :  { %v779_v59 = vadd.f32 %v778_v58, %v720_v57 }
 0x5e5   :  { %v782_v60 = vadd.f32 %v779_v59, %v622_v48 }
 0x5e7   :  { %v783_v61 = vsel %vm594_vm9, %v782_v60, 0.0  ;;  %v787_v62 = vmul.f32 %v782_v60, %v782_v60 }
 0x5e8   :  { %784 = vadd.xlane.f32.xlu0 %v783_v61 }
 0x5e9   :  { %v788_v63 = vsel %vm594_vm9, %v787_v62, 0.0 }
 0x5ea   :  { %v780_v1 = vpop.f32.mrf.mxu0  ;;  %789 = vadd.xlane.f32.xlu1 %v788_v63 }
 0x65b   :  { %v785_v11 = vpop.xlane.xlu0 %784 }
 0x65c   :  { %v786_v12 = vmul.f32 0.03125, %v785_v11 }
 0x65d   :  { %v790_v13 = vpop.xlane.xlu1 %789 }
 0x65e   :  { %v792_v14 = vmul.f32 %v786_v12, %v786_v12  ;;  %v791_v15 = vmul.f32 0.03125, %v790_v13  ;;  %v794_v24 = vsub.f32 %v782_v60, %v786_v12 }
 0x660   :  { %v793_v16 = vsub.f32 %v791_v15, %v792_v14 }
 0x662   :  { %v795_v17 = vadd.f32 1e-05, %v793_v16 }
 0x664   :  { %1249 = vrsqrt.f32 %v795_v17  ;;  %vm802_vm14 = vweird.f32 %v795_v17 }
 0x66a   :  { %v1250_v18 = vpop.eup %1249 }
 0x66b   :  { %v797_v19 = vmul.f32 %v1250_v18, %v795_v17  ;;  %vm803_vm13 = vweird.f32 %v1250_v18 }
 0x66c   :  { %vm804_vm15 = vmor %vm802_vm14, %vm803_vm13 }
 0x66d   :  { %v798_v20 = vmul.f32 %v1250_v18, %v797_v19 }
 0x66f   :  { %v799_v21 = vmul.f32 0.5, %v798_v20 }
 0x671   :  { %v800_v22 = vsub.f32 1.5, %v799_v21 }
 0x673   :  { %v801_v23 = vmul.f32 %v1250_v18, %v800_v22 }
 0x675   :  { %v805_v26 = vsel %vm804_vm15, %v1250_v18, %v801_v23 }
 0x676   :  { %v806_v27 = vmul.f32 %v805_v26, %v794_v24 }
 0x678   :  { %v808_v29 = vmul.f32 %v807_v25, %v806_v27 }
 0x67a   :  { %v810_v30 = vadd.f32 %v809_v28, %v808_v29 }
 0x67c   :  { %v811_v31 = vpack.c.bf16 %v810_v30, %v810_v30  ;;  %v891_v35 = vrot.slane %v810_v30, 6 }
 0x67e   :  { %885 = vmatmul.bf16.vlgmr.msra.gmra.mxu1 %v811_v31 }
 0x6fb   :  { %v886_v33 = vpop.f32.mrf.mxu1 }
 0x6fc   :  { %v887_v34 = vadd.f32 %v886_v33, %v828_v32 }
 0x6fe   :  { %v893_v36 = vsel %vm594_vm9, %v887_v34, %v891_v35 }
 0x6ff   :  { %v895_v37 = vsel %vm894_vm0, %v893_v36, 0.0 }
 0x700   :  { %896 = vst [vmem:[%s1544_s10] sm:$0xff] %v895_v37 }
 0x703   :  { %v888_v38 = vpop.f32.mrf.mxu1 }
 0x704   :  { %901 = vsyncpa [#allocation3], 1 }
 0x705   :  { %902 = vsyncpa [#allocation5], 1 }
 0x706   :  { %903 = vsyncpa [#allocation8], 1 }
 0x707   :  { %904 = vsyncpa [#allocation11], 1 }

</bundles_post_ra>
